<compile_context>
chip_gen: v7x
topology: tpu7x:2x2x1
jax: 0.10.0
libtpu: 0.0.40
codegen_flags: <defaults>
</compile_context>

<pallas_src>
import math

import jax
import jax.numpy as jnp
from jax.experimental import pallas as pl
from jax.experimental.pallas import tpu as pltpu  # noqa: F401  (not needed for the no-grid kernel)

D_MODEL = 4
NUM_HEADS = 2
D_HEAD = D_MODEL // NUM_HEADS


def mha_kernel(x_ref, w_qkv_ref, b_qkv_ref, wo_ref, bo_ref, out_ref, attn_ref):
    """One invocation handles every batch element and head: fused QKV + attention + out-proj."""
    H, B, S, _ = attn_ref.shape
    x = x_ref[...]                                   # (B*S, D_MODEL)
    wo = wo_ref[...]                                 # (D_MODEL, D_MODEL)
    bo = bo_ref[...]                                 # (1, D_MODEL)
    scale = 1.0 / math.sqrt(D_HEAD)

    # Single fused QKV projection. Lane layout: [q_h0 .. q_h(H-1) | k_h0 .. | v_h0 ..].
    qkv = jnp.dot(x, w_qkv_ref[...], preferred_element_type=jnp.float32) + b_qkv_ref[...]
    qkv = qkv.reshape(B, S, 3 * H * D_HEAD)          # sublane-only split: (B*S, .) -> (B, S, .)

    acc = None
    for h in range(H):                               # static loop, H = 2
        q = qkv[:, :, h * D_HEAD:(h + 1) * D_HEAD]                       # (B, S, D_HEAD)
        k = qkv[:, :, (H + h) * D_HEAD:(H + h + 1) * D_HEAD]             # (B, S, D_HEAD)
        v = qkv[:, :, (2 * H + h) * D_HEAD:(2 * H + h + 1) * D_HEAD]     # (B, S, D_HEAD)

        # q @ k^T without materializing the transpose: contract the last (feature) dims.
        scores = jnp.einsum("bqd,bkd->bqk", q, k,
                            preferred_element_type=jnp.float32) * scale  # (B, S, S)
        scores = scores - jnp.max(scores, axis=-1, keepdims=True)
        e = jnp.exp(scores)
        # Exact reciprocal (approx=False): keeps softmax rows summing to 1 within fp32 rounding.
        # Only B*S = 16 scalars per head, so the extra precision is effectively free.
        inv_denom = pl.reciprocal(jnp.sum(e, axis=-1, keepdims=True))
        w = e * inv_denom
        attn_ref[h] = w.astype(attn_ref.dtype)       # one contiguous (B, S, S) store per head

        head_out = jnp.einsum("bqk,bkd->bqd", w, v,
                              preferred_element_type=jnp.float32)        # (B, S, D_HEAD)
        # Concat-free output projection: sum over heads of head_out_h @ W_o row-slice.
        contrib = jnp.dot(head_out.reshape(B * S, D_HEAD),
                          wo[h * D_HEAD:(h + 1) * D_HEAD, :],
                          preferred_element_type=jnp.float32)            # (B*S, D_MODEL)
        acc = contrib if acc is None else acc + contrib

    # TODO(synk): nn.Dropout(0.3) is identity here (eval semantics); no stochastic drop in-kernel.
    out_ref[...] = (acc + bo).astype(out_ref.dtype)


def mha_forward(x, wq, bq, wk, bk, wv, bv, wo, bo):
    B, S, _ = x.shape

    # Wrapper-side packing: six (D_MODEL, D_HEAD) projections -> one (D_MODEL, 3*H*D_HEAD).
    def pack_w(w):   # (H, D_MODEL, D_HEAD) -> (D_MODEL, H*D_HEAD)
        return jnp.transpose(w, (1, 0, 2)).reshape(D_MODEL, NUM_HEADS * D_HEAD)

    def pack_b(b):   # (H, 1, D_HEAD) -> (1, H*D_HEAD)
        return jnp.transpose(b, (1, 0, 2)).reshape(1, NUM_HEADS * D_HEAD)

    w_qkv = jnp.concatenate([pack_w(wq), pack_w(wk), pack_w(wv)], axis=1)
    b_qkv = jnp.concatenate([pack_b(bq), pack_b(bk), pack_b(bv)], axis=1)
    x_flat = x.reshape(B * S, D_MODEL)

    flops = (2 * B * S * D_MODEL * 3 * NUM_HEADS * D_HEAD          # fused QKV
             + NUM_HEADS * 2 * B * S * S * D_HEAD * 2               # scores + attn@v
             + NUM_HEADS * 2 * B * S * D_HEAD * D_MODEL)            # output projection
    bytes_accessed = 4 * (x_flat.size + w_qkv.size + b_qkv.size + wo.size + bo.size
                          + B * S * D_MODEL + NUM_HEADS * B * S * S)

    out_flat, attn_hb = pl.pallas_call(
        mha_kernel,
        out_shape=(
            jax.ShapeDtypeStruct((B * S, D_MODEL), jnp.float32),
            jax.ShapeDtypeStruct((NUM_HEADS, B, S, S), jnp.float32),
        ),
        cost_estimate=pl.CostEstimate(
            flops=flops,
            transcendentals=NUM_HEADS * B * S * (S + 1),             # exp + reciprocal
            bytes_accessed=bytes_accessed,
        ),
    )(x_flat, w_qkv, b_qkv, wo, bo)

    proj = out_flat.reshape(B, S, D_MODEL)
    attn = jnp.transpose(attn_hb, (1, 0, 2, 3))      # (B, H, S, S), matches PyTorch layout
    return proj, attn


def mha_reference(x, wq, bq, wk, bk, wv, bv, wo, bo):
    """Pure-JAX reference mirroring the PyTorch forward."""
    outs, attns = [], []
    for h in range(NUM_HEADS):
        q = x @ wq[h] + bq[h]
        k = x @ wk[h] + bk[h]
        v = x @ wv[h] + bv[h]
        scores = jnp.einsum("bqd,bkd->bqk", q, k) / math.sqrt(D_HEAD)
        w = jax.nn.softmax(scores, axis=-1)
        attns.append(w)
        outs.append(jnp.einsum("bqk,bkd->bqd", w, v))
    concat = jnp.concatenate(outs, axis=-1)
    proj = concat @ wo + bo
    attn = jnp.stack(attns, axis=1)
    return proj, attn


if __name__ == "__main__":
    B, S = 2, 8
    key = jax.random.PRNGKey(0)
    keys = jax.random.split(key, 9)

    # Deterministic parameter init (PyTorch-Linear-style uniform bounds).
    bound_in = 1.0 / math.sqrt(D_MODEL)
    x = jax.random.normal(keys[0], (B, S, D_MODEL), dtype=jnp.float32)
    wq = jax.random.uniform(keys[1], (NUM_HEADS, D_MODEL, D_HEAD), minval=-bound_in, maxval=bound_in)
    bq = jax.random.uniform(keys[2], (NUM_HEADS, 1, D_HEAD), minval=-bound_in, maxval=bound_in)
    wk = jax.random.uniform(keys[3], (NUM_HEADS, D_MODEL, D_HEAD), minval=-bound_in, maxval=bound_in)
    bk = jax.random.uniform(keys[4], (NUM_HEADS, 1, D_HEAD), minval=-bound_in, maxval=bound_in)
    wv = jax.random.uniform(keys[5], (NUM_HEADS, D_MODEL, D_HEAD), minval=-bound_in, maxval=bound_in)
    bv = jax.random.uniform(keys[6], (NUM_HEADS, 1, D_HEAD), minval=-bound_in, maxval=bound_in)
    wo = jax.random.uniform(keys[7], (D_MODEL, D_MODEL), minval=-bound_in, maxval=bound_in)
    bo = jax.random.uniform(keys[8], (1, D_MODEL), minval=-bound_in, maxval=bound_in)

    proj, attn = mha_forward(x, wq, bq, wk, bk, wv, bv, wo, bo)
    jax.block_until_ready((proj, attn))

    proj_expected, attn_expected = mha_reference(x, wq, bq, wk, bk, wv, bv, wo, bo)
    assert proj.shape == (B, S, D_MODEL) and attn.shape == (B, NUM_HEADS, S, S)
    assert jnp.allclose(proj, proj_expected, atol=1e-3, rtol=1e-3), "projection mismatch vs reference"
    assert jnp.allclose(attn, attn_expected, atol=1e-3, rtol=1e-3), "attention-weights mismatch vs reference"
    # Exact reciprocal in the softmax denominator -> rows sum to 1 within fp32 rounding.
    assert jnp.allclose(jnp.sum(attn, axis=-1), 1.0, atol=1e-3), "softmax rows must sum to 1"

    print("KERNEL_OK")
</pallas_src>

<mosaic_0001>
module attributes {stable_mosaic.version = 11 : i64} {
  func.func @mha_kernel(%arg0: memref<16x4xf32, #tpu.memory_space<vmem>>, %arg1: memref<4x12xf32, #tpu.memory_space<vmem>>, %arg2: memref<1x12xf32, #tpu.memory_space<vmem>>, %arg3: memref<4x4xf32, #tpu.memory_space<vmem>>, %arg4: memref<1x4xf32, #tpu.memory_space<vmem>>, %arg5: memref<16x4xf32, #tpu.memory_space<vmem>>, %arg6: memref<2x2x8x8xf32, #tpu.memory_space<vmem>>) attributes {dimension_semantics = [], scalar_prefetch = 0 : i64, scratch_operands = 0 : i64, tpu.core_type = #tpu.core_type<tc>} {
    %c0 = arith.constant 0 : index
    %c0_0 = arith.constant 0 : index
    %0 = vector.load %arg0[%c0, %c0_0] : memref<16x4xf32, #tpu.memory_space<vmem>>, vector<16x4xf32>
    %c0_1 = arith.constant 0 : index
    %c0_2 = arith.constant 0 : index
    %1 = vector.load %arg3[%c0_1, %c0_2] : memref<4x4xf32, #tpu.memory_space<vmem>>, vector<4x4xf32>
    %c0_3 = arith.constant 0 : index
    %c0_4 = arith.constant 0 : index
    %2 = vector.load %arg4[%c0_3, %c0_4] : memref<1x4xf32, #tpu.memory_space<vmem>>, vector<1x4xf32>
    %c0_5 = arith.constant 0 : index
    %c0_6 = arith.constant 0 : index
    %3 = vector.load %arg1[%c0_5, %c0_6] : memref<4x12xf32, #tpu.memory_space<vmem>>, vector<4x12xf32>
    %cst = arith.constant dense<0.000000e+00> : vector<16x12xf32>
    %4 = tpu.matmul %0, %3, %cst {dimension_numbers = #tpu.dot_dimension_numbers<[1], [0], [0], [1], [0, 0, 1, 1], [], []>} : vector<16x4xf32>, vector<4x12xf32>, vector<16x12xf32> -> vector<16x12xf32>
    %c0_7 = arith.constant 0 : index
    %c0_8 = arith.constant 0 : index
    %5 = vector.load %arg2[%c0_7, %c0_8] : memref<1x12xf32, #tpu.memory_space<vmem>>, vector<1x12xf32>
    %6 = vector.broadcast %5 : vector<1x12xf32> to vector<16x12xf32>
    %7 = arith.addf %4, %6 : vector<16x12xf32>
    %8 = vector.shape_cast %7 : vector<16x12xf32> to vector<2x8x12xf32>
    %9 = vector.extract_strided_slice %8 {offsets = [0, 0, 0], sizes = [2, 8, 2], strides = [1, 1, 1]} : vector<2x8x12xf32> to vector<2x8x2xf32>
    %10 = vector.extract_strided_slice %8 {offsets = [0, 0, 4], sizes = [2, 8, 2], strides = [1, 1, 1]} : vector<2x8x12xf32> to vector<2x8x2xf32>
    %11 = vector.extract_strided_slice %8 {offsets = [0, 0, 8], sizes = [2, 8, 2], strides = [1, 1, 1]} : vector<2x8x12xf32> to vector<2x8x2xf32>
    "tpu.trace_start"() <{level = 10 : i32, message = "bqd,bkd->bqk"}> : () -> ()
    %cst_9 = arith.constant dense<0.000000e+00> : vector<2x8x8xf32>
    %12 = tpu.matmul %9, %10, %cst_9 {dimension_numbers = #tpu.dot_dimension_numbers<[2], [2], [1], [1], [0, 0, 0, 1, 1, 1], [0], [0]>} : vector<2x8x2xf32>, vector<2x8x2xf32>, vector<2x8x8xf32> -> vector<2x8x8xf32>
    "tpu.trace_stop"() : () -> ()
    %cst_10 = arith.constant 0.707106769 : f32
    %13 = vector.broadcast %cst_10 : f32 to vector<2x8x8xf32>
    %14 = arith.mulf %12, %13 : vector<2x8x8xf32>
    %cst_11 = arith.constant dense<0xFF800000> : vector<2x8xf32>
    %15 = vector.multi_reduction <maximumf>, %14, %cst_11 [2] : vector<2x8x8xf32> to vector<2x8xf32>
    %16 = vector.shape_cast %15 : vector<2x8xf32> to vector<2x8x1xf32>
    %17 = vector.broadcast %16 : vector<2x8x1xf32> to vector<2x8x8xf32>
    %18 = arith.subf %14, %17 : vector<2x8x8xf32>
    %19 = math.exp %18 : vector<2x8x8xf32>
    %cst_12 = arith.constant dense<0.000000e+00> : vector<2x8xf32>
    %20 = vector.multi_reduction <add>, %19, %cst_12 [2] : vector<2x8x8xf32> to vector<2x8xf32>
    %21 = vector.shape_cast %20 : vector<2x8xf32> to vector<2x8x1xf32>
    %22 = tpu.reciprocal %21 : vector<2x8x1xf32> -> vector<2x8x1xf32>
    %23 = vector.broadcast %22 : vector<2x8x1xf32> to vector<2x8x8xf32>
    %24 = arith.mulf %19, %23 : vector<2x8x8xf32>
    %c0_13 = arith.constant 0 : index
    %c0_14 = arith.constant 0 : index
    %c0_15 = arith.constant 0 : index
    %c0_16 = arith.constant 0 : index
    %25 = vector.load %arg6[%c0_13, %c0_14, %c0_15, %c0_16] : memref<2x2x8x8xf32, #tpu.memory_space<vmem>>, vector<1x2x8x8xf32>
    %26 = vector.shape_cast %25 : vector<1x2x8x8xf32> to vector<2x8x8xf32>
    %27 = vector.shape_cast %24 : vector<2x8x8xf32> to vector<1x2x8x8xf32>
    tpu.vector_store %arg6[%c0_13, %c0_14, %c0_15, %c0_16], %27 {strides = array<i32>} : memref<2x2x8x8xf32, #tpu.memory_space<vmem>>, vector<1x2x8x8xf32>,
    "tpu.trace_start"() <{level = 10 : i32, message = "bqk,bkd->bqd"}> : () -> ()
    %cst_17 = arith.constant dense<0.000000e+00> : vector<2x8x2xf32>
    %28 = tpu.matmul %24, %11, %cst_17 {dimension_numbers = #tpu.dot_dimension_numbers<[2], [1], [1], [2], [0, 0, 0, 1, 1, 2], [0], [0]>} : vector<2x8x8xf32>, vector<2x8x2xf32>, vector<2x8x2xf32> -> vector<2x8x2xf32>
    "tpu.trace_stop"() : () -> ()
    %29 = vector.shape_cast %28 : vector<2x8x2xf32> to vector<16x2xf32>
    %30 = vector.extract_strided_slice %1 {offsets = [0, 0], sizes = [2, 4], strides = [1, 1]} : vector<4x4xf32> to vector<2x4xf32>
    %cst_18 = arith.constant dense<0.000000e+00> : vector<16x4xf32>
    %31 = tpu.matmul %29, %30, %cst_18 {dimension_numbers = #tpu.dot_dimension_numbers<[1], [0], [0], [1], [0, 0, 1, 1], [], []>} : vector<16x2xf32>, vector<2x4xf32>, vector<16x4xf32> -> vector<16x4xf32>
    %32 = vector.extract_strided_slice %8 {offsets = [0, 0, 2], sizes = [2, 8, 2], strides = [1, 1, 1]} : vector<2x8x12xf32> to vector<2x8x2xf32>
    %33 = vector.extract_strided_slice %8 {offsets = [0, 0, 6], sizes = [2, 8, 2], strides = [1, 1, 1]} : vector<2x8x12xf32> to vector<2x8x2xf32>
    %34 = vector.extract_strided_slice %8 {offsets = [0, 0, 10], sizes = [2, 8, 2], strides = [1, 1, 1]} : vector<2x8x12xf32> to vector<2x8x2xf32>
    "tpu.trace_start"() <{level = 10 : i32, message = "bqd,bkd->bqk"}> : () -> ()
    %cst_19 = arith.constant dense<0.000000e+00> : vector<2x8x8xf32>
    %35 = tpu.matmul %32, %33, %cst_19 {dimension_numbers = #tpu.dot_dimension_numbers<[2], [2], [1], [1], [0, 0, 0, 1, 1, 1], [0], [0]>} : vector<2x8x2xf32>, vector<2x8x2xf32>, vector<2x8x8xf32> -> vector<2x8x8xf32>
    "tpu.trace_stop"() : () -> ()
    %cst_20 = arith.constant 0.707106769 : f32
    %36 = vector.broadcast %cst_20 : f32 to vector<2x8x8xf32>
    %37 = arith.mulf %35, %36 : vector<2x8x8xf32>
    %cst_21 = arith.constant dense<0xFF800000> : vector<2x8xf32>
    %38 = vector.multi_reduction <maximumf>, %37, %cst_21 [2] : vector<2x8x8xf32> to vector<2x8xf32>
    %39 = vector.shape_cast %38 : vector<2x8xf32> to vector<2x8x1xf32>
    %40 = vector.broadcast %39 : vector<2x8x1xf32> to vector<2x8x8xf32>
    %41 = arith.subf %37, %40 : vector<2x8x8xf32>
    %42 = math.exp %41 : vector<2x8x8xf32>
    %cst_22 = arith.constant dense<0.000000e+00> : vector<2x8xf32>
    %43 = vector.multi_reduction <add>, %42, %cst_22 [2] : vector<2x8x8xf32> to vector<2x8xf32>
    %44 = vector.shape_cast %43 : vector<2x8xf32> to vector<2x8x1xf32>
    %45 = tpu.reciprocal %44 : vector<2x8x1xf32> -> vector<2x8x1xf32>
    %46 = vector.broadcast %45 : vector<2x8x1xf32> to vector<2x8x8xf32>
    %47 = arith.mulf %42, %46 : vector<2x8x8xf32>
    %c1 = arith.constant 1 : index
    %c0_23 = arith.constant 0 : index
    %c0_24 = arith.constant 0 : index
    %c0_25 = arith.constant 0 : index
    %48 = vector.load %arg6[%c1, %c0_23, %c0_24, %c0_25] : memref<2x2x8x8xf32, #tpu.memory_space<vmem>>, vector<1x2x8x8xf32>
    %49 = vector.shape_cast %48 : vector<1x2x8x8xf32> to vector<2x8x8xf32>
    %50 = vector.shape_cast %47 : vector<2x8x8xf32> to vector<1x2x8x8xf32>
    tpu.vector_store %arg6[%c1, %c0_23, %c0_24, %c0_25], %50 {strides = array<i32>} : memref<2x2x8x8xf32, #tpu.memory_space<vmem>>, vector<1x2x8x8xf32>,
    "tpu.trace_start"() <{level = 10 : i32, message = "bqk,bkd->bqd"}> : () -> ()
    %cst_26 = arith.constant dense<0.000000e+00> : vector<2x8x2xf32>
    %51 = tpu.matmul %47, %34, %cst_26 {dimension_numbers = #tpu.dot_dimension_numbers<[2], [1], [1], [2], [0, 0, 0, 1, 1, 2], [0], [0]>} : vector<2x8x8xf32>, vector<2x8x2xf32>, vector<2x8x2xf32> -> vector<2x8x2xf32>
    "tpu.trace_stop"() : () -> ()
    %52 = vector.shape_cast %51 : vector<2x8x2xf32> to vector<16x2xf32>
    %53 = vector.extract_strided_slice %1 {offsets = [2, 0], sizes = [2, 4], strides = [1, 1]} : vector<4x4xf32> to vector<2x4xf32>
    %cst_27 = arith.constant dense<0.000000e+00> : vector<16x4xf32>
    %54 = tpu.matmul %52, %53, %cst_27 {dimension_numbers = #tpu.dot_dimension_numbers<[1], [0], [0], [1], [0, 0, 1, 1], [], []>} : vector<16x2xf32>, vector<2x4xf32>, vector<16x4xf32> -> vector<16x4xf32>
    %55 = arith.addf %31, %54 : vector<16x4xf32>
    %56 = vector.broadcast %2 : vector<1x4xf32> to vector<16x4xf32>
    %57 = arith.addf %55, %56 : vector<16x4xf32>
    %c0_28 = arith.constant 0 : index
    %c0_29 = arith.constant 0 : index
    %58 = vector.load %arg5[%c0_28, %c0_29] : memref<16x4xf32, #tpu.memory_space<vmem>>, vector<16x4xf32>
    tpu.vector_store %arg5[%c0_28, %c0_29], %57 {strides = array<i32>} : memref<16x4xf32, #tpu.memory_space<vmem>>, vector<16x4xf32>,
    return
  }
}

</mosaic_0001>

<bundles_post_ra>
// kernel: tpu_custom_call.1
= control target key start
LH: loop header
LB: loop body
LE: loop exit
PB: predicated region body
PF: predicated region fallthrough
CT: control target
= control target key end

     0   :  { %vm42_vm0 = vcmask 1043456   ;;  %vm35_vm1 = vcmask 31744   ;;  %s1297_s0 = inlined_call_operand.vmem [shape: f32[16,4], index: 0, kind: input, shape index: {}]   ;;  %s1298_s1 = inlined_call_operand.vmem [shape: f32[4,12], index: 1, kind: input, shape index: {}]   ;;  %s1299_s2 = inlined_call_operand.vmem [shape: f32[1,12], index: 2, kind: input, shape index: {}]   ;;  %s1300_s3 = inlined_call_operand.vmem [shape: f32[4,4], index: 3, kind: input, shape index: {}]   ;;  %s1301_s4 = inlined_call_operand.vmem [shape: f32[1,4], index: 4, kind: input, shape index: {}]   ;;  %s1302_s5 = inlined_call_operand.vmem [shape: f32[16,4], index: 5, kind: output, shape index: {0}]   ;;  %s1303_s6 = inlined_call_operand.hbm [shape: f32[2,2,8,8], index: 6, kind: output, shape index: {1}]  }
   0x1   :  { %v27_v0 = vld [vmem:[%s1298_s1] sm:$0xf]  ;;  %v24_v2 = vld [vmem:[%s1297_s0 + $0x8] sm:$0xff] }
   0x2   :  { %v23_v1 = vld [vmem:[%s1297_s0] sm:$0xff]  ;;  %1037 = vmatprep.subr.msk.mxu0 %vm42_vm0, %v27_v0 }
   0x3   :  { %1039 = vmatprep.mubr.msk.f32.mxu0 %vm35_vm1, %v23_v1 }
   0x4   :  { %12 = vsyncpa [#allocation3], 0  ;;  %1038 = vmatpush3.msk.msra.mxu0 %vm42_vm0, %v27_v0  ;;  %v1144_v3 = vmov 0.0   ;;  %vm1145_vm2 = vmmov 0   ;;  %v989_v4 = vld [vmem:[%s1299_s2] ss:$0 sm:$0xff] }
   0x5   :  { %1040 = vmatmul.mubr.msk.f32.vlgmr.msra.gmra.mrb[0].mxu0 %vm35_vm1, %v24_v2  ;;  %1042 = vmatprep.subr.mxu0 %v1144_v3  ;;  %s1146_s27 = smov 124   ;;  %vm124_vm3 = vcmask 15360   ;;  %vm278_vm4 = vcmask 64512   ;;  %s1147_s2 = smov 120   ;;  %vm798_vm5 = vcmask 1041408  }
   0x6   :  { %1052 = vmatprep.subr.mxu1 %v1144_v3  ;;  %1044 = vmatprep.mubr.msk.f32.mxu0 %vm1145_vm2, %v1144_v3  ;;  %s1148_s28 = smov 122   ;;  %s1149_s29 = smov 126  }
   0x7   :  { %1054 = vmatprep.mubr.msk.f32.mxu1 %vm1145_vm2, %v1144_v3  ;;  %s1150_s30 = smov 118   ;;  %s1151_s9 = smov [#allocation2]  }
  0xd8   :  { %v1041_v5 = vpop.f32.mrb[0].mxu0 }
  0xd9   :  { %v112_v6 = vpop.f32.mrb[1].mxu0  ;;  %v1212_v8 = vadd.f32 %v1041_v5, %v989_v4 }
  0xda   :  { %v1209_v7 = vadd.f32 %v989_v4, %v112_v6 }
  0xdc   :  { %122 = vrot.lane.b32.xlu0 %v1209_v7, %s1146_s27 }
  0xe0   :  { %200 = vrot.lane.b32.xlu0 %v1212_v8, %s1146_s27 }
 0x14e   :  { %v123_v9 = vpop.permute.xlu0 %122 }
 0x14f   :  { %1043 = vmatpush3.xpose.msk.msra.mxu0 %vm124_vm3, %v123_v9 }
 0x150   :  { %1047 = vmatprep.subr.mxu0 %v1144_v3 }
 0x152   :  { %1045 = vmatmul.mubr.msk.f32.vlgmr.msra.gmra.mrb[2].mxu0 %vm124_vm3, %v1209_v7  ;;  %v201_v10 = vpop.permute.xlu0 %200 }
 0x153   :  { %1048 = vmatpush3.xpose.msk.msra.mxu0 %vm124_vm3, %v201_v10  ;;  %1049 = vmatprep.mubr.msk.f32.mxu0 %vm1145_vm2, %v1144_v3 }
 0x154   :  { %1057 = vmatprep.subr.mxu0 %v1144_v3 }
 0x156   :  { %1050 = vmatmul.mubr.msk.f32.vlgmr.msra.gmra.mrb[4].mxu0 %vm124_vm3, %v1212_v8 }
 0x157   :  { %1059 = vmatprep.mubr.msk.f32.mxu0 %vm1145_vm2, %v1144_v3 }
 0x225   :  { %v195_v11 = vpop.f32.mrb[2].mxu0 }
 0x226   :  { %v276_v12 = vmul.f32 0.70710677, %v195_v11  ;;  %v1046_v13 = vpop.f32.mrb[3].mxu0 }
 0x228   :  { %v279_v14 = vsel %vm278_vm4, %v276_v12, -inf }
 0x229   :  { %280 = vmax.xlane.f32.xlu1 %v279_v14  ;;  %v272_v15 = vpop.f32.mrb[4].mxu0 }
 0x22a   :  { %v277_v16 = vmul.f32 0.70710677, %v272_v15  ;;  %v1051_v17 = vpop.f32.mrb[5].mxu0 }
 0x22c   :  { %v282_v18 = vsel %vm278_vm4, %v277_v16, -inf }
 0x22d   :  { %283 = vmax.xlane.f32.xlu1 %v282_v18 }
 0x23e   :  { %303 = vrot.lane.b32.xlu1 %v1209_v7, %s1147_s2 }
 0x242   :  { %379 = vrot.lane.b32.xlu1 %v1212_v8, %s1147_s2 }
 0x246   :  { %457 = vrot.lane.b32.xlu1 %v1209_v7, %s1148_s28 }
 0x24a   :  { %535 = vrot.lane.b32.xlu1 %v1212_v8, %s1148_s28 }
 0x2b6   :  { %v281_v19 = vpop.xlane.xlu1 %280 }
 0x2b7   :  { %v285_v20 = vsub.f32 %v276_v12, %v281_v19 }
 0x2b9   :  { %v287_v21 = vmul.f32 1.442695, %v285_v20 }
 0x2ba   :  { %v284_v22 = vpop.xlane.xlu1 %283 }
 0x2bb   :  { %1104 = vpow2.f32 %v287_v21  ;;  %v286_v23 = vsub.f32 %v277_v16, %v284_v22 }
 0x2bd   :  { %v289_v24 = vmul.f32 1.442695, %v286_v23 }
 0x2be   :  { %v304_v25 = vpop.permute.xlu1 %303 }
 0x2bf   :  { %1106 = vpow2.f32 %v289_v24  ;;  %1053 = vmatpush3.msra.mxu1 %v304_v25 }
 0x2c0   :  { %1062 = vmatprep.subr.mxu1 %v1144_v3 }
 0x2c2   :  { %v380_v26 = vpop.permute.xlu1 %379 }
 0x2c3   :  { %1058 = vmatpush3.msra.mxu0 %v380_v26 }
 0x2c4   :  { %1067 = vmatprep.subr.mxu0 %v1144_v3 }
 0x2c5   :  { %v1105_v27 = vpop.eup %1104 }
 0x2c6   :  { %v291_v28 = vsel %vm278_vm4, %v1105_v27, 0.0  ;;  %v458_v31 = vpop.permute.xlu1 %457 }
 0x2c7   :  { %292 = vadd.xlane.f32.xlu0 %v291_v28 }
 0x2c9   :  { %v1107_v29 = vpop.eup %1106 }
 0x2ca   :  { %v294_v30 = vsel %vm278_vm4, %v1107_v29, 0.0  ;;  %v536_v32 = vpop.permute.xlu1 %535 }
 0x2cb   :  { %295 = vadd.xlane.f32.xlu1 %v294_v30 }
 0x2dc   :  { %533 = vrot.lane.b32.xlu1 %v1212_v8, %s1149_s29 }
 0x2dd   :  { %455 = vrot.lane.b32.xlu0 %v1209_v7, %s1149_s29 }
 0x354   :  { %v293_v33 = vpop.xlane.xlu0 %292 }
 0x355   :  { %1108 = vrcp.f32 %v293_v33 }
 0x358   :  { %v296_v34 = vpop.xlane.xlu1 %295  ;;  %v456_v39 = vpop.permute.xlu0 %455 }
 0x359   :  { %1110 = vrcp.f32 %v296_v34 }
 0x35c   :  { %v534_v40 = vpop.permute.xlu1 %533 }
 0x35f   :  { %v1109_v35 = vpop.eup %1108 }
 0x360   :  { %v299_v36 = vmul.f32 %v1109_v35, %v1105_v27 }
 0x362   :  { %301 = vst.msk [vmem:[#allocation2] sm:$0xff] %vm278_vm4, %v299_v36  ;;  %1055 = vmatmul.mubr.msk.f32.vlgmr.msra.gmra.mrb[0].mxu1 %vm278_vm4, %v299_v36 }
 0x363   :  { %v1111_v37 = vpop.eup %1110  ;;  %1063 = vmatpush3.xpose.msk.msra.mxu1 %vm124_vm3, %v458_v31  ;;  %1064 = vmatprep.mubr.msk.f32.mxu1 %vm1145_vm2, %v1144_v3 }
 0x364   :  { %v300_v38 = vmul.f32 %v1111_v37, %v1107_v29  ;;  %1072 = vmatprep.subr.mxu1 %v1144_v3 }
 0x366   :  { %302 = vst.msk [vmem:[#allocation2 + $0x8] sm:$0xff] %vm278_vm4, %v300_v38  ;;  %1060 = vmatmul.mubr.msk.f32.vlgmr.msra.gmra.mrb[6].mxu0 %vm278_vm4, %v300_v38  ;;  %1065 = vmatmul.mubr.msk.f32.vlgmr.msra.gmra.mrb[2].mxu1 %vm124_vm3, %v456_v39 }
 0x367   :  { %1068 = vmatpush3.xpose.msk.msra.mxu0 %vm124_vm3, %v536_v32  ;;  %1069 = vmatprep.mubr.msk.f32.mxu0 %vm1145_vm2, %v1144_v3 }
 0x368   :  { %1077 = vmatprep.subr.mxu0 %v1144_v3  ;;  %1074 = vmatprep.mubr.msk.f32.mxu1 %vm1145_vm2, %v1144_v3 }
 0x36a   :  { %1070 = vmatmul.mubr.msk.f32.vlgmr.msra.gmra.mrb[8].mxu0 %vm124_vm3, %v534_v40 }
 0x36b   :  { %1079 = vmatprep.mubr.msk.f32.mxu0 %vm1145_vm2, %v1144_v3 }
 0x435   :  { %v375_v41 = vpop.f32.mrb[0].mxu1 }
 0x436   :  { %v1056_v42 = vpop.f32.mrb[1].mxu1 }
 0x439   :  { %v451_v43 = vpop.f32.mrb[6].mxu0  ;;  %v529_v44 = vpop.f32.mrb[2].mxu1 }
 0x43a   :  { %v611_v45 = vmul.f32 0.70710677, %v529_v44  ;;  %v1061_v46 = vpop.f32.mrb[7].mxu0  ;;  %v1066_v47 = vpop.f32.mrb[3].mxu1 }
 0x43c   :  { %v613_v48 = vsel %vm278_vm4, %v611_v45, -inf }
 0x43d   :  { %v607_v49 = vpop.f32.mrb[8].mxu0  ;;  %614 = vmax.xlane.f32.xlu1 %v613_v48 }
 0x43e   :  { %v612_v50 = vmul.f32 0.70710677, %v607_v49  ;;  %v1071_v51 = vpop.f32.mrb[9].mxu0 }
 0x440   :  { %v616_v52 = vsel %vm278_vm4, %v612_v50, -inf }
 0x441   :  { %617 = vmax.xlane.f32.xlu0 %v616_v52 }
 0x457   :  { %714 = vrot.lane.b32.xlu0 %v1212_v8, %s1150_s30 }
 0x4ca   :  { %v615_v53 = vpop.xlane.xlu1 %614 }
 0x4cb   :  { %v619_v54 = vsub.f32 %v611_v45, %v615_v53 }
 0x4cd   :  { %v621_v55 = vmul.f32 1.442695, %v619_v54 }
 0x4ce   :  { %v618_v56 = vpop.xlane.xlu0 %617 }
 0x4cf   :  { %1112 = vpow2.f32 %v621_v55  ;;  %v620_v57 = vsub.f32 %v612_v50, %v618_v56 }
 0x4d1   :  { %v623_v58 = vmul.f32 1.442695, %v620_v57 }
 0x4d2   :  { %v715_v59 = vpop.permute.xlu0 %714 }
 0x4d3   :  { %1114 = vpow2.f32 %v623_v58  ;;  %1078 = vmatpush3.msra.mxu0 %v715_v59 }
 0x4d9   :  { %v1113_v60 = vpop.eup %1112 }
 0x4da   :  { %v625_v61 = vsel %vm278_vm4, %v1113_v60, 0.0 }
 0x4db   :  { %626 = vadd.xlane.f32.xlu1 %v625_v61 }
 0x4dd   :  { %v1115_v62 = vpop.eup %1114 }
 0x4de   :  { %v628_v63 = vsel %vm278_vm4, %v1115_v62, 0.0 }
 0x4df   :  { %629 = vadd.xlane.f32.xlu1 %v628_v63 }
 0x4f0   :  { %638 = vrot.lane.b32.xlu1 %v1209_v7, %s1150_s30  ;;  %v25_v7 = vld [vmem:[%s1300_s3] sm:$0xf]  ;;  %s976_s3 = sshll.u32 %s1151_s9, 4  ;;  %s977_s3 = int_to_ptr.vmem [resolvable:$true] %s976_s3 }
 0x4f1   :  { %v791_v8 = vrot.slane %v25_v7, 2  ;;  %s1120_s10 = scalar_lea.vmem %s977_s3, 512  ;;  %p1125_p1 = scmp.lt.s32.totalorder %s977_s3, %s977_s3 }
 0x4f2   :  { %p1121_p0 = scmp.ne.s32.totalorder %s977_s3, %s1120_s10  ;;  %p1126_p2 = scmp.lt.s32.totalorder %s1120_s10, %s1120_s10 }
 0x4f4   :  { %p1127_p3 = por %p1126_p2, %p1125_p1 }
 0x4f6   :  { %p1128_p4 = pnand %p1127_p3, %p1121_p0 }
 0x568   :  { %v627_v0 = vpop.xlane.xlu1 %626 }
 0x569   :  { %1116 = vrcp.f32 %v627_v0 }
 0x56c   :  { %v630_v1 = vpop.xlane.xlu1 %629 }
 0x56d   :  { %1118 = vrcp.f32 %v630_v1 }
 0x570   :  { %v639_v2 = vpop.permute.xlu1 %638 }
 0x571   :  { %1073 = vmatpush3.msra.mxu1 %v639_v2 }
 0x572   :  { %1082 = vmatprep.subr.msk.mxu1 %vm798_vm5, %v791_v8 }
 0x573   :  { %v1117_v3 = vpop.eup %1116 }
 0x574   :  { %v633_v4 = vmul.f32 %v1117_v3, %v1113_v60 }
 0x576   :  { %636 = vst.msk [vmem:[#allocation2 + $0x10] sm:$0xff] %vm278_vm4, %v633_v4  ;;  %1075 = vmatmul.mubr.msk.f32.vlgmr.msra.gmra.mrb[4].mxu1 %vm278_vm4, %v633_v4 }
 0x577   :  { %v1119_v5 = vpop.eup %1118  ;;  %1083 = vmatpush3.msk.msra.mxu1 %vm798_vm5, %v791_v8 }
 0x578   :  { %v634_v6 = vmul.f32 %v1119_v5, %v1115_v62  ;;  %1087 = vmatprep.subr.msk.mxu1 %vm798_vm5, %v25_v7 }
 0x57a   :  { %637 = vst.msk [vmem:[#allocation2 + $0x18] sm:$0xff] %vm278_vm4, %v634_v6  ;;  %1080 = vmatmul.mubr.msk.f32.vlgmr.msra.gmra.mrb[10].mxu0 %vm278_vm4, %v634_v6 }
 0x649   :  { %v710_v9 = vpop.f32.mrb[4].mxu1 }
 0x64a   :  { %v1076_v10 = vpop.f32.mrb[5].mxu1  ;;  %1084 = vmatprep.mubr.msk.f32.mxu1 %vm124_vm3, %v710_v9 }
 0x64d   :  { %v786_v11 = vpop.f32.mrb[10].mxu0 }
 0x64e   :  { %v1081_v12 = vpop.f32.mrb[11].mxu0  ;;  %1085 = vmatmul.mubr.msk.f32.vlgmr.msra.gmra.mrb[6].mxu1 %vm124_vm3, %v786_v11 }
 0x64f   :  { %1088 = vmatpush3.msk.msra.mxu1 %vm798_vm5, %v25_v7  ;;  %1089 = vmatprep.mubr.msk.f32.mxu1 %vm124_vm3, %v375_v41 }
 0x656   :  { %1090 = vmatmul.mubr.msk.f32.vlgmr.msra.gmra.mrb[6].mxu1 %vm124_vm3, %v451_v43 }
 0x657   :  { %1131 = shalt.err (!%p1128_p4)
}
 0x658   :  { %s1132_s13 = scalar_lea.hbm %s1303_s6, 512 }
 0x659   :  { %p1133_p5 = scmp.ne.s32.totalorder %s1303_s6, %s1132_s13  ;;  %p1136_p6 = scmp.lt.u32.totalorder %s1132_s13, %s1303_s6 }
 0x65b   :  { %p1138_p7 = pnand %p1136_p6, %p1133_p5 }
 0x65d   :  { %1141 = shalt.err (!%p1138_p7)
}
 0x65e   :  { %s1152_s18 = smov 128   ;;  %s1153_s19 = smov 8   ;;  %v1011_v13 = vld [vmem:[%s1301_s4] ss:$0 sm:$0xff] }
 0x65f   :  { %982 = dma.vmem_to_hbm [thread:$0]  %s977_s3, 512, %s1303_s6, [#allocation3], %s1152_s18, %s1152_s18, %s1153_s19  }
 0x729   :  { %v1091_v14 = vpop.f32.mrb[6].mxu1 }
 0x72a   :  { %v966_v15 = vadd.f32 %v1091_v14, %v1011_v13  ;;  %v950_v16 = vpop.f32.mrb[7].mxu1 }
 0x72b   :  { %v965_v17 = vadd.f32 %v1011_v13, %v950_v16 }
 0x72c   :  { %968 = vst.msk [vmem:[%s1302_s5 + $0x8] sm:$0xff] %vm35_vm1, %v966_v15 }
 0x72d   :  { %967 = vst.msk [vmem:[%s1302_s5] sm:$0xff] %vm35_vm1, %v965_v17 }
 0x72e   :  { %1142 = dma.done.wait [#allocation3], 512  }
 0x72f   :  { %1143 = vsyncadd [#allocation3], 4294966784 }
 0x730   :  { %988 = vsyncpa [#allocation3], 1 }

</bundles_post_ra>
